<compile_context>
chip_gen: v5e
topology: v5e:2x2
jax: 0.10.0
libtpu: 0.0.40
codegen_flags: <defaults>
</compile_context>

<pallas_src>
import jax
import jax.numpy as jnp
from jax.experimental import pallas as pl
from jax.experimental.pallas import tpu as pltpu


def _round_up(x, m):
    return (x + m - 1) // m * m


# ----------------------------- Pallas kernel ---------------------------------
def _make_kernel(n_idx_cols, bias_rows):
    """out_tile = multihot(pre-offset ids) @ fused_table (bias = always-hot rows)."""

    def kernel(idx_ref, tab_ref, out_ref):
        tn = out_ref.shape[0]          # packed rows in this tile (multiple of 8)
        k_pad = tab_ref.shape[0]       # padded table rows = matmul K (lane-dense, %128)

        iota = jax.lax.broadcasted_iota(jnp.int32, (tn, k_pad), 1)
        ids = idx_ref[...]             # (tn, n_idx_cols) int32, pre-offset per column/group
        hot = iota == ids[:, 0:1]
        for j in range(1, n_idx_cols):             # offsets disjoint -> OR is exact
            hot = hot | (iota == ids[:, j:j + 1])
        for b in bias_rows:                        # compile-time constants: bias rows
            hot = hot | (iota == b)
        hot = hot.astype(tab_ref.dtype)            # 0/1 exact in bf16 too

        acc = jnp.dot(hot, tab_ref[...], preferred_element_type=jnp.float32)
        out_ref[...] = acc.astype(out_ref.dtype)

    return kernel


def _invariant_spec(shape):
    """Grid-invariant input: fetched once; single-buffer it to halve its VMEM."""
    index_map = lambda i: (0,) * len(shape)
    try:
        return pl.BlockSpec(shape, index_map, pipeline_mode=pl.Buffered(1))
    except Exception:  # older API without pipeline_mode -> default (double) buffering
        return pl.BlockSpec(shape, index_map)


def _vmem_limit_bytes(table_bytes, tn_packed, k_pad, out_width, n_idx_cols):
    idx_tile = tn_packed * _round_up(max(n_idx_cols, 1), 128) * 4   # lane-padded int32
    out_tile = tn_packed * out_width * 4
    hot_tile = tn_packed * k_pad * 4
    need = table_bytes + 2 * (idx_tile + out_tile) + 4 * hot_tile + (4 << 20)
    # 48 MiB is safe on every generation (v7x has only 64 MiB physical VMEM).
    return max(32 << 20, min(int(1.25 * need), 48 << 20))


# --------------------- prologue (cache per weight update) ---------------------
def prepare_node_input_params(tables, w_full, bias, *, table_dtype=jnp.bfloat16):
    """Fold nn.Linear (+ dense quirk + bias) into one packed fused table.

    Call ONCE per weight update and reuse across batches; only node_input_forward
    is per-batch work.  Default bf16 table: MXU-native, half the VMEM/HBM traffic.
    """
    tables = tuple(tables)
    n_cols = len(tables)
    embed_dims = [int(t.shape[1]) for t in tables]
    cate_nums = [int(t.shape[0]) for t in tables]
    hidden = int(w_full.shape[1])
    total_cate = sum(cate_nums)
    has_dense = int(w_full.shape[0]) >= sum(embed_dims) + n_cols

    # Split the (output_dim, hidden) weight by input-column group.
    splits, off = [], 0
    for d in embed_dims:
        splits.append(w_full[off:off + d])
        off += d
    w_dense = w_full[off:off + n_cols] if has_dense else None

    # fused[i] = table_c[i] @ W_c (+ i * W_dense[c]  == dense-quirk folded in).
    # TODO(synk): at very large vocab with bf16 tables, keep the i*W_dense term in f32
    #             (add it post-matmul on the VPU) to avoid bf16 error growing with i.
    fused_rows = []
    for c, (tab, wc) in enumerate(zip(tables, splits)):
        f = tab.astype(jnp.float32) @ wc.astype(jnp.float32)
        if has_dense:
            f = f + jnp.arange(tab.shape[0], dtype=jnp.float32)[:, None] * w_dense[c][None, :]
        fused_rows.append(f)
    fused = jnp.concatenate(fused_rows, axis=0)        # (total_cate, hidden) f32

    # Lane packing: pack `pack` consecutive rows into one 128-lane output row.
    pack = (128 // hidden) if (hidden < 128 and 128 % hidden == 0) else 1
    out_width = 128 if pack > 1 else _round_up(hidden, 128)
    k_used = pack * total_cate + pack                  # + pack always-hot bias rows
    k_pad = _round_up(k_used, 128)                     # lane-dense matmul K

    bias_vec = jnp.reshape(bias, (hidden,)).astype(jnp.float32)
    table = jnp.zeros((k_pad, out_width), jnp.float32)
    for g in range(pack):                              # block-diagonal replica per group
        table = table.at[g * total_cate:(g + 1) * total_cate,
                         g * hidden:(g + 1) * hidden].set(fused)
        table = table.at[pack * total_cate + g,
                         g * hidden:(g + 1) * hidden].set(bias_vec)
    table = table.astype(table_dtype)

    offsets, o = [], 0
    for cn in cate_nums:
        offsets.append(o)
        o += cn

    return dict(
        table=table, hidden=hidden, pack=pack, out_width=out_width, k_pad=k_pad,
        total_cate=total_cate, offsets=tuple(offsets), cate_nums=tuple(cate_nums),
        n_cols=n_cols, bias_rows=tuple(pack * total_cate + g for g in range(pack)),
    )


# ------------------------------ per-batch forward ------------------------------
def node_input_forward(idx, params, *, tile_rows=1024, out_dtype=jnp.float32, trim=True):
    """idx: (N, n_cols) int32 sparse ids. Returns (N, hidden) (padded rows trimmed)."""
    n, n_cols = idx.shape
    assert n_cols == params["n_cols"]
    pack, hidden = params["pack"], params["hidden"]
    total_cate, k_pad, out_width = params["total_cate"], params["k_pad"], params["out_width"]

    # Row tiling: big tiles amortize ~0.35us/step overhead, but keep >=2 grid steps
    # when possible so v7x's second TensorCore is not idle.
    row_q = 8 * pack                                   # keeps packed tile sublane-aligned
    n_q = _round_up(max(n, 1), row_q)
    tile = _round_up(min(tile_rows, n_q), row_q)
    if n_q >= 2 * row_q:
        half = max(row_q, (n_q // 2) // row_q * row_q)
        tile = min(tile, half) if tile >= n_q else tile
    n_pad = _round_up(n, tile)
    grid = (n_pad // tile,)
    tn_packed = tile // pack

    # Offset + clamp (mimics XLA gather clamping for OOB ids) + group-pack the ids.
    cate_max = jnp.asarray(params["cate_nums"], jnp.int32) - 1
    offs = jnp.asarray(params["offsets"], jnp.int32)
    ids = jnp.clip(idx.astype(jnp.int32), 0, cate_max[None, :]) + offs[None, :]
    ids = ids + ((jnp.arange(n, dtype=jnp.int32) % pack) * total_cate)[:, None]
    ids = jnp.pad(ids, ((0, n_pad - n), (0, 0)), constant_values=-1)   # -1 matches nothing
    ids = ids.reshape(n_pad // pack, pack * n_cols)

    table = params["table"]
    table_bytes = int(table.size) * table.dtype.itemsize
    vmem_limit = _vmem_limit_bytes(table_bytes, tn_packed, k_pad, out_width, pack * n_cols)

    kernel = _make_kernel(pack * n_cols, params["bias_rows"])
    idx_spec = pl.BlockSpec((tn_packed, pack * n_cols), lambda i: (i, 0))
    tab_spec = _invariant_spec((k_pad, out_width))
    out_spec = pl.BlockSpec((tn_packed, out_width), lambda i: (i, 0))

    out = pl.pallas_call(
        kernel,
        out_shape=jax.ShapeDtypeStruct((n_pad // pack, out_width), out_dtype),
        grid=grid,
        in_specs=[idx_spec, tab_spec],
        out_specs=out_spec,
        compiler_params=pltpu.CompilerParams(
            dimension_semantics=("parallel",),         # rows independent (megacore split)
            vmem_limit_bytes=vmem_limit,
        ),
    )(ids, table)

    if pack > 1:
        out = out.reshape(n_pad, hidden)               # row-major -> free (lane-packed)
    elif out_width != hidden:
        out = out[:, :hidden]
    if trim and n_pad != n:
        out = out[:n]
    return out


# ------------------------------- pure-JAX reference -----------------------------
def node_input_reference(idx, tables, dense, w_full, bias):
    embs = [tab[idx[:, c]] for c, tab in enumerate(tables)]
    feats = jnp.concatenate(embs + [dense], axis=1)    # (N, output_dim)
    return feats @ w_full + bias                       # (N, hidden)


if __name__ == "__main__":
    key = jax.random.PRNGKey(0)

    # Module configuration: embedded_cols=["a","b","c"], embeded_dims=[8,12,12],
    # category_nums=[10,20,16], dense_columns=3 cols, linear_map=True, hidden_dim=32.
    category_nums = [10, 20, 16]
    embed_dims = [8, 12, 12]
    hidden_dim = 32
    output_dim = sum(embed_dims) + 3                   # = 35

    keys = jax.random.split(key, 10)
    tables = tuple(
        jax.random.normal(keys[i], (cn, d), dtype=jnp.float32)
        for i, (cn, d) in enumerate(zip(category_nums, embed_dims))
    )
    w_full = (jax.random.normal(keys[3], (output_dim, hidden_dim), dtype=jnp.float32)
              * (1.0 / jnp.sqrt(output_dim)))
    bias = (jax.random.normal(keys[4], (1, hidden_dim), dtype=jnp.float32)
            * (1.0 / jnp.sqrt(output_dim)))

    def make_idx(k, n):
        ks = jax.random.split(k, 3)
        return jnp.stack(
            [jax.random.randint(ks[c], (n,), 0, category_nums[c], dtype=jnp.int32)
             for c in range(3)], axis=1)

    # Prologue is built ONCE per weight update (cached), per the perf review.
    params_f32 = prepare_node_input_params(tables, w_full, bias, table_dtype=jnp.float32)
    params_bf16 = prepare_node_input_params(tables, w_full, bias)   # bf16 default

    # --- test 1: small batch, f32 table, bit-close to the f32 reference ----------
    N = 8
    idx = make_idx(keys[5], N)
    dense = idx.astype(jnp.float32)                    # faithful forward() quirk
    ref = node_input_reference(idx, tables, dense, w_full, bias)
    out = jax.block_until_ready(node_input_forward(idx, params_f32))
    assert out.shape == (N, hidden_dim)
    assert jnp.allclose(out, ref, atol=1e-4, rtol=1e-4), "f32 path mismatch (N=8)"

    # --- test 2: multi-tile grid (exercises megacore split, padding, lane packing) --
    N2 = 70
    idx2 = make_idx(keys[6], N2)
    ref2 = node_input_reference(idx2, tables, idx2.astype(jnp.float32), w_full, bias)
    out2 = jax.block_until_ready(node_input_forward(idx2, params_f32))
    assert out2.shape == (N2, hidden_dim)
    assert jnp.allclose(out2, ref2, atol=1e-4, rtol=1e-4), "f32 path mismatch (N=70)"

    # --- test 3: production-default bf16 table path (looser tolerance) -----------
    out_bf16 = jax.block_until_ready(node_input_forward(idx, params_bf16))
    assert out_bf16.shape == (N, hidden_dim)
    assert jnp.allclose(out_bf16, ref, atol=5e-2, rtol=5e-2), "bf16 path mismatch"

    print("KERNEL_OK")
</pallas_src>

<mosaic_0001>
module attributes {stable_mosaic.version = 11 : i64} {
  func.func @kernel(%arg0: i32, %arg1: memref<8x12xi32, #tpu.memory_space<vmem>>, %arg2: memref<256x128xf32, #tpu.memory_space<vmem>>, %arg3: memref<8x128xf32, #tpu.memory_space<vmem>>) attributes {dimension_semantics = [#tpu.dimension_semantics<parallel>], iteration_bounds = array<i64: 1>, scalar_prefetch = 0 : i64, scratch_operands = 0 : i64, tpu.core_type = #tpu.core_type<tc>, window_params = [{transform_indices = @transform_0, window_bounds = array<i64: 8, 12>}, {pipeline_mode = #tpu.pipeline_mode<synchronous>, transform_indices = @transform_1, window_bounds = array<i64: 256, 128>}, {transform_indices = @transform_2, window_bounds = array<i64: 8, 128>}]} {
    %0 = tpu.iota {dimensions = array<i32: 1>} : vector<8x256xi32>
    %c0 = arith.constant 0 : index
    %c0_0 = arith.constant 0 : index
    %1 = vector.load %arg1[%c0, %c0_0] : memref<8x12xi32, #tpu.memory_space<vmem>>, vector<8x12xi32>
    %2 = vector.extract_strided_slice %1 {offsets = [0, 0], sizes = [8, 1], strides = [1, 1]} : vector<8x12xi32> to vector<8x1xi32>
    %3 = vector.broadcast %2 : vector<8x1xi32> to vector<8x256xi32>
    %4 = arith.cmpi eq, %0, %3 : vector<8x256xi32>
    %5 = vector.extract_strided_slice %1 {offsets = [0, 1], sizes = [8, 1], strides = [1, 1]} : vector<8x12xi32> to vector<8x1xi32>
    %6 = vector.broadcast %5 : vector<8x1xi32> to vector<8x256xi32>
    %7 = arith.cmpi eq, %0, %6 : vector<8x256xi32>
    %8 = arith.ori %4, %7 : vector<8x256xi1>
    %9 = vector.extract_strided_slice %1 {offsets = [0, 2], sizes = [8, 1], strides = [1, 1]} : vector<8x12xi32> to vector<8x1xi32>
    %10 = vector.broadcast %9 : vector<8x1xi32> to vector<8x256xi32>
    %11 = arith.cmpi eq, %0, %10 : vector<8x256xi32>
    %12 = arith.ori %8, %11 : vector<8x256xi1>
    %13 = vector.extract_strided_slice %1 {offsets = [0, 3], sizes = [8, 1], strides = [1, 1]} : vector<8x12xi32> to vector<8x1xi32>
    %14 = vector.broadcast %13 : vector<8x1xi32> to vector<8x256xi32>
    %15 = arith.cmpi eq, %0, %14 : vector<8x256xi32>
    %16 = arith.ori %12, %15 : vector<8x256xi1>
    %17 = vector.extract_strided_slice %1 {offsets = [0, 4], sizes = [8, 1], strides = [1, 1]} : vector<8x12xi32> to vector<8x1xi32>
    %18 = vector.broadcast %17 : vector<8x1xi32> to vector<8x256xi32>
    %19 = arith.cmpi eq, %0, %18 : vector<8x256xi32>
    %20 = arith.ori %16, %19 : vector<8x256xi1>
    %21 = vector.extract_strided_slice %1 {offsets = [0, 5], sizes = [8, 1], strides = [1, 1]} : vector<8x12xi32> to vector<8x1xi32>
    %22 = vector.broadcast %21 : vector<8x1xi32> to vector<8x256xi32>
    %23 = arith.cmpi eq, %0, %22 : vector<8x256xi32>
    %24 = arith.ori %20, %23 : vector<8x256xi1>
    %25 = vector.extract_strided_slice %1 {offsets = [0, 6], sizes = [8, 1], strides = [1, 1]} : vector<8x12xi32> to vector<8x1xi32>
    %26 = vector.broadcast %25 : vector<8x1xi32> to vector<8x256xi32>
    %27 = arith.cmpi eq, %0, %26 : vector<8x256xi32>
    %28 = arith.ori %24, %27 : vector<8x256xi1>
    %29 = vector.extract_strided_slice %1 {offsets = [0, 7], sizes = [8, 1], strides = [1, 1]} : vector<8x12xi32> to vector<8x1xi32>
    %30 = vector.broadcast %29 : vector<8x1xi32> to vector<8x256xi32>
    %31 = arith.cmpi eq, %0, %30 : vector<8x256xi32>
    %32 = arith.ori %28, %31 : vector<8x256xi1>
    %33 = vector.extract_strided_slice %1 {offsets = [0, 8], sizes = [8, 1], strides = [1, 1]} : vector<8x12xi32> to vector<8x1xi32>
    %34 = vector.broadcast %33 : vector<8x1xi32> to vector<8x256xi32>
    %35 = arith.cmpi eq, %0, %34 : vector<8x256xi32>
    %36 = arith.ori %32, %35 : vector<8x256xi1>
    %37 = vector.extract_strided_slice %1 {offsets = [0, 9], sizes = [8, 1], strides = [1, 1]} : vector<8x12xi32> to vector<8x1xi32>
    %38 = vector.broadcast %37 : vector<8x1xi32> to vector<8x256xi32>
    %39 = arith.cmpi eq, %0, %38 : vector<8x256xi32>
    %40 = arith.ori %36, %39 : vector<8x256xi1>
    %41 = vector.extract_strided_slice %1 {offsets = [0, 10], sizes = [8, 1], strides = [1, 1]} : vector<8x12xi32> to vector<8x1xi32>
    %42 = vector.broadcast %41 : vector<8x1xi32> to vector<8x256xi32>
    %43 = arith.cmpi eq, %0, %42 : vector<8x256xi32>
    %44 = arith.ori %40, %43 : vector<8x256xi1>
    %45 = vector.extract_strided_slice %1 {offsets = [0, 11], sizes = [8, 1], strides = [1, 1]} : vector<8x12xi32> to vector<8x1xi32>
    %46 = vector.broadcast %45 : vector<8x1xi32> to vector<8x256xi32>
    %47 = arith.cmpi eq, %0, %46 : vector<8x256xi32>
    %48 = arith.ori %44, %47 : vector<8x256xi1>
    %c184_i32 = arith.constant 184 : i32
    %49 = vector.broadcast %c184_i32 : i32 to vector<8x256xi32>
    %50 = arith.cmpi eq, %0, %49 : vector<8x256xi32>
    %51 = arith.ori %48, %50 : vector<8x256xi1>
    %c185_i32 = arith.constant 185 : i32
    %52 = vector.broadcast %c185_i32 : i32 to vector<8x256xi32>
    %53 = arith.cmpi eq, %0, %52 : vector<8x256xi32>
    %54 = arith.ori %51, %53 : vector<8x256xi1>
    %c186_i32 = arith.constant 186 : i32
    %55 = vector.broadcast %c186_i32 : i32 to vector<8x256xi32>
    %56 = arith.cmpi eq, %0, %55 : vector<8x256xi32>
    %57 = arith.ori %54, %56 : vector<8x256xi1>
    %c187_i32 = arith.constant 187 : i32
    %58 = vector.broadcast %c187_i32 : i32 to vector<8x256xi32>
    %59 = arith.cmpi eq, %0, %58 : vector<8x256xi32>
    %60 = arith.ori %57, %59 : vector<8x256xi1>
    %61 = arith.extui %60 : vector<8x256xi1> to vector<8x256xi32>
    %62 = arith.sitofp %61 : vector<8x256xi32> to vector<8x256xf32>
    %c0_1 = arith.constant 0 : index
    %c0_2 = arith.constant 0 : index
    %63 = vector.load %arg2[%c0_1, %c0_2] : memref<256x128xf32, #tpu.memory_space<vmem>>, vector<256x128xf32>
    %cst = arith.constant dense<0.000000e+00> : vector<8x128xf32>
    %64 = tpu.matmul %62, %63, %cst {dimension_numbers = #tpu.dot_dimension_numbers<[1], [0], [0], [1], [0, 0, 1, 1], [], []>} : vector<8x256xf32>, vector<256x128xf32>, vector<8x128xf32> -> vector<8x128xf32>
    %c0_3 = arith.constant 0 : index
    %c0_4 = arith.constant 0 : index
    %65 = vector.load %arg3[%c0_3, %c0_4] : memref<8x128xf32, #tpu.memory_space<vmem>>, vector<8x128xf32>
    tpu.vector_store %arg3[%c0_3, %c0_4], %64 {strides = array<i32>} : memref<8x128xf32, #tpu.memory_space<vmem>>, vector<8x128xf32>,
    return
  }
  func.func @transform_0(%arg0: i32) -> (i32, i32) {
    %c0_i32 = arith.constant 0 : i32
    %c0_i32_0 = arith.constant 0 : i32
    return %arg0, %c0_i32 : i32, i32
  }
  func.func @transform_1(%arg0: i32) -> (i32, i32) {
    %c0_i32 = arith.constant 0 : i32
    %c0_i32_0 = arith.constant 0 : i32
    %c0_i32_1 = arith.constant 0 : i32
    return %c0_i32, %c0_i32_0 : i32, i32
  }
  func.func @transform_2(%arg0: i32) -> (i32, i32) {
    %c0_i32 = arith.constant 0 : i32
    %c0_i32_0 = arith.constant 0 : i32
    return %arg0, %c0_i32 : i32, i32
  }
}

</mosaic_0001>

<bundles_post_ra>
// kernel: tpu_custom_call.1
= control target key start
LH: loop header
LB: loop body
LE: loop exit
PB: predicated region body
PF: predicated region fallthrough
CT: control target
= control target key end

     0   :  { %7 = vsyncpa [#allocation3], 0  ;;  %s425_s0 = inlined_call_operand.hbm [shape: s32[8,12], index: 0, kind: input, shape index: {}]   ;;  %s426_s1 = inlined_call_operand.hbm [shape: f32[256,128], index: 1, kind: input, shape index: {}]   ;;  %s427_s2 = inlined_call_operand.hbm [shape: f32[8,128], index: 2, kind: output, shape index: {}]  }
   0x1   :  { %8 = vsyncpa [#allocation6], 0 }
   0x2   :  { %9 = vsyncpa [#allocation4], 0  ;;  %s15_s11 = sshll.u32 %s425_s0, 4  ;;  %s350_s12 = smov [#allocation2]   ;;  %s16_s11 = int_to_ptr.hbm [resolvable:$true] %s15_s11 }
   0x3   :  { %s17_s13 = sshll.u32 %s350_s12, 4  ;;  %s25_s16 = sshll.u32 %s426_s1, 4  ;;  %s18_s13 = int_to_ptr.vmem [resolvable:$true] %s17_s13  ;;  %s26_s16 = int_to_ptr.hbm [resolvable:$true] %s25_s16 }
   0x4   :  { %20 = dma.hbm_to_vmem [thread:$0]  %s16_s11, 128, %s18_s13, [#allocation3]  }
   0x5   :  { %s351_s17 = smov [#allocation5]   ;;  %s352_s19 = smov 128  }
   0x6   :  { %s27_s18 = sshll.u32 %s351_s17, 4  ;;  %s353_s20 = smov 8   ;;  %s28_s18 = int_to_ptr.vmem [resolvable:$true] %s27_s18 }
   0x7   :  { %33 = dma.hbm_to_vmem [thread:$0]  %s26_s16, 4096, %s28_s18, [#allocation6], %s352_s19, %s352_s19, %s353_s20  }
   0x8   :  { %344 = dma.done.wait [#allocation3], 128  }
   0x9   :  { %345 = vsyncadd [#allocation3], 4294967168 }
   0xa   :  { %346 = dma.done.wait [#allocation6], 4096  }
   0xb   :  { %347 = vsyncadd [#allocation6], 4294963200  ;;  %v354_v0 = vmov 2   ;;  %v355_v1 = vmov 0   ;;  %v356_v2 = vmov 4   ;;  %v45_v3 = vld [vmem:[#allocation2] sm:$0xff]  ;;  %v42_v31 = vlaneseq }
   0xc   :  { %261 = vset.pattern.permute.xlu1 %v354_v0  ;;  %259 = vset.pattern.permute.xlu0 %v355_v1  ;;  %v357_v4 = vmov 3   ;;  %v358_v5 = vmov 1   ;;  %v359_v6 = vmov 5   ;;  %v360_v7 = vmov 6   ;;  %v163_v13 = vld [vmem:[#allocation5 + $0x78] sm:$0xff]  ;;  %v162_v14 = vld [vmem:[#allocation5 + $0x70] sm:$0xff] }
   0xd   :  { %263 = vset.pattern.permute.xlu2 %v356_v2  ;;  %59 = vperm.xlu1 %261, %v45_v3   ;;  %v361_v8 = vmov 8   ;;  %v362_v9 = vmov 7   ;;  %v363_v10 = vmov 9   ;;  %v364_v11 = vmov 11   ;;  %v161_v15 = vld [vmem:[#allocation5 + $0x68] sm:$0xff]  ;;  %v179_v16 = vld [vmem:[#allocation5 + $0xf8] sm:$0xff] }
   0xe   :  { %47 = vperm.xlu0 %259, %v45_v3   ;;  %73 = vperm.xlu2 %263, %v45_v3   ;;  %v365_v12 = vmov 10   ;;  %v160_v17 = vld [vmem:[#allocation5 + $0x60] sm:$0xff]  ;;  %v178_v18 = vld [vmem:[#allocation5 + $0xf0] sm:$0xff]  ;;  %v159_v19 = vld [vmem:[#allocation5 + $0x58] sm:$0xff]  ;;  %v389_v39 = vand.u32 127, %v42_v31  ;;  %v366_v60 = vmov 0.0  }
   0xf   :  { %180 = vmatpush.msra.mxu0 %v163_v13  ;;  %200 = vmatpush.msra.mxu1 %v179_v16  ;;  %v177_v20 = vld [vmem:[#allocation5 + $0xe8] sm:$0xff]  ;;  %v158_v21 = vld [vmem:[#allocation5 + $0x50] sm:$0xff]  ;;  %v176_v22 = vld [vmem:[#allocation5 + $0xe0] sm:$0xff]  ;;  %s367_s0 = smov [#allocation7]   ;;  %s228_s23 = sshll.u32 %s427_s2, 4  ;;  %s229_s23 = int_to_ptr.hbm [resolvable:$true] %s228_s23 }
  0x10   :  { %v157_v23 = vld [vmem:[#allocation5 + $0x48] sm:$0xff]  ;;  %v175_v24 = vld [vmem:[#allocation5 + $0xd8] sm:$0xff]  ;;  %v156_v25 = vld [vmem:[#allocation5 + $0x40] sm:$0xff]  ;;  %v392_v44 = vadd.s32 128, %v389_v39  ;;  %s226_s1 = sshll.u32 %s367_s0, 4  ;;  %s227_s1 = int_to_ptr.vmem [resolvable:$true] %s226_s1 }
  0x11   :  { %181 = vmatpush.msra.mxu0 %v162_v14  ;;  %201 = vmatpush.msra.mxu1 %v178_v18  ;;  %v174_v26 = vld [vmem:[#allocation5 + $0xd0] sm:$0xff]  ;;  %v155_v27 = vld [vmem:[#allocation5 + $0x38] sm:$0xff]  ;;  %v173_v28 = vld [vmem:[#allocation5 + $0xc8] sm:$0xff] }
  0x12   :  { %v154_v29 = vld [vmem:[#allocation5 + $0x30] sm:$0xff]  ;;  %v172_v30 = vld [vmem:[#allocation5 + $0xc0] sm:$0xff]  ;;  %v153_v35 = vld [vmem:[#allocation5 + $0x28] sm:$0xff] }
  0x13   :  { %182 = vmatpush.msra.mxu0 %v161_v15  ;;  %202 = vmatpush.msra.mxu1 %v177_v20  ;;  %v171_v36 = vld [vmem:[#allocation5 + $0xb8] sm:$0xff]  ;;  %v152_v37 = vld [vmem:[#allocation5 + $0x20] sm:$0xff]  ;;  %v170_v38 = vld [vmem:[#allocation5 + $0xb0] sm:$0xff] }
  0x14   :  { %v151_v40 = vld [vmem:[#allocation5 + $0x18] sm:$0xff]  ;;  %v169_v41 = vld [vmem:[#allocation5 + $0xa8] sm:$0xff]  ;;  %v150_v42 = vld [vmem:[#allocation5 + $0x10] sm:$0xff] }
  0x15   :  { %262 = vset.pattern.permute.xlu1 %v357_v4  ;;  %183 = vmatpush.msra.mxu0 %v160_v17  ;;  %v168_v43 = vld [vmem:[#allocation5 + $0xa0] sm:$0xff]  ;;  %v149_v45 = vld [vmem:[#allocation5 + $0x8] sm:$0xff]  ;;  %v167_v46 = vld [vmem:[#allocation5 + $0x98] sm:$0xff] }
  0x16   :  { %260 = vset.pattern.permute.xlu0 %v358_v5  ;;  %66 = vperm.xlu1 %262, %v45_v3   ;;  %v148_v49 = vld [vmem:[#allocation5] sm:$0xff]  ;;  %v166_v51 = vld [vmem:[#allocation5 + $0x90] sm:$0xff]  ;;  %v165_v52 = vld [vmem:[#allocation5 + $0x88] sm:$0xff] }
  0x17   :  { %52 = vperm.xlu0 %260, %v45_v3   ;;  %264 = vset.pattern.permute.xlu2 %v359_v6  ;;  %v164_v53 = vld [vmem:[#allocation5 + $0x80] sm:$0xff] }
  0x18   :  { %80 = vperm.xlu2 %264, %v45_v3   ;;  %184 = vmatpush.msra.mxu0 %v159_v19 }
  0x19   :  { %203 = vmatpush.msra.mxu1 %v176_v22 }
  0x1a   :  { %185 = vmatpush.msra.mxu0 %v158_v21 }
  0x1b   :  { %204 = vmatpush.msra.mxu1 %v175_v24 }
  0x1c   :  { %186 = vmatpush.msra.mxu0 %v157_v23 }
  0x1d   :  { %205 = vmatpush.msra.mxu1 %v174_v26 }
  0x1e   :  { %265 = vset.pattern.permute.xlu1 %v360_v7  ;;  %187 = vmatpush.msra.mxu0 %v156_v25 }
  0x1f   :  { %267 = vset.pattern.permute.xlu0 %v361_v8  ;;  %87 = vperm.xlu1 %265, %v45_v3  }
  0x20   :  { %101 = vperm.xlu0 %267, %v45_v3   ;;  %266 = vset.pattern.permute.xlu2 %v362_v9 }
  0x21   :  { %94 = vperm.xlu2 %266, %v45_v3   ;;  %188 = vmatpush.msra.mxu0 %v155_v27 }
  0x22   :  { %206 = vmatpush.msra.mxu1 %v173_v28 }
  0x23   :  { %189 = vmatpush.msra.mxu0 %v154_v29 }
  0x24   :  { %207 = vmatpush.msra.mxu1 %v172_v30 }
  0x25   :  { %190 = vmatpush.msra.mxu0 %v153_v35 }
  0x26   :  { %208 = vmatpush.msra.mxu1 %v171_v36 }
  0x27   :  { %268 = vset.pattern.permute.xlu1 %v363_v10  ;;  %191 = vmatpush.msra.mxu0 %v152_v37 }
  0x28   :  { %271 = vset.pattern.permute.xlu0 %v364_v11  ;;  %108 = vperm.xlu1 %268, %v45_v3  }
  0x29   :  { %269 = vset.pattern.permute.xlu2 %v365_v12  ;;  %209 = vmatpush.msra.mxu1 %v170_v38 }
  0x2a   :  { %115 = vperm.xlu2 %269, %v45_v3   ;;  %192 = vmatpush.msra.mxu0 %v151_v40 }
  0x2b   :  { %210 = vmatpush.msra.mxu1 %v169_v41 }
  0x2c   :  { %193 = vmatpush.msra.mxu0 %v150_v42 }
  0x2d   :  { %211 = vmatpush.msra.mxu1 %v168_v43 }
  0x2e   :  { %194 = vmatpush.msra.mxu0 %v149_v45 }
  0x2f   :  { %212 = vmatpush.msra.mxu1 %v167_v46 }
  0x30   :  { %270 = vset.pattern.permute.xlu1 %v364_v11  ;;  %195 = vmatpush.msra.mxu0 %v148_v49 }
  0x31   :  { %122 = vperm.xlu1 %270, %v45_v3   ;;  %213 = vmatpush.msra.mxu1 %v166_v51 }
  0x33   :  { %214 = vmatpush.msra.mxu1 %v165_v52 }
  0x35   :  { %215 = vmatpush.msra.mxu1 %v164_v53 }
  0x68   :  { %v74_v32 = vpop.permute.xlu2 %73 }
  0x69   :  { %vm75_vm14 = vcmp.eq.s32.totalorder %v389_v39, %v74_v32  ;;  %vm76_vm15 = vcmp.eq.s32.totalorder %v392_v44, %v74_v32 }
  0x72   :  { %v81_v50 = vpop.permute.xlu2 %80 }
  0x7b   :  { %v95_v55 = vpop.permute.xlu2 %94 }
  0x7f   :  { %v60_v33 = vpop.permute.xlu1 %59 }
  0x80   :  { %v48_v34 = vpop.permute.xlu0 %47  ;;  %vm61_vm6 = vcmp.eq.s32.totalorder %v389_v39, %v60_v33  ;;  %vm62_vm7 = vcmp.eq.s32.totalorder %v392_v44, %v60_v33 }
  0x81   :  { %vm49_vm0 = vcmp.eq.s32.totalorder %v389_v39, %v48_v34  ;;  %vm50_vm1 = vcmp.eq.s32.totalorder %v392_v44, %v48_v34 }
  0x84   :  { %v116_v58 = vpop.permute.xlu2 %115 }
  0x88   :  { %v67_v47 = vpop.permute.xlu1 %66 }
  0x89   :  { %v53_v48 = vpop.permute.xlu0 %52  ;;  %vm68_vm10 = vcmp.eq.s32.totalorder %v389_v39, %v67_v47  ;;  %vm69_vm11 = vcmp.eq.s32.totalorder %v392_v44, %v67_v47 }
  0x8a   :  { %vm54_vm2 = vcmp.eq.s32.totalorder %v389_v39, %v53_v48  ;;  %vm55_vm3 = vcmp.eq.s32.totalorder %v392_v44, %v53_v48 }
  0x8b   :  { %vm56_vm4 = vmor %vm49_vm0, %vm54_vm2 }
  0x8c   :  { %vm57_vm5 = vmor %vm50_vm1, %vm55_vm3  ;;  %vm82_vm1 = vcmp.eq.s32.totalorder %v389_v39, %v81_v50  ;;  %vm83_vm3 = vcmp.eq.s32.totalorder %v392_v44, %v81_v50 }
  0x8d   :  { %vm63_vm8 = vmor %vm56_vm4, %vm61_vm6 }
  0x8e   :  { %vm64_vm9 = vmor %vm57_vm5, %vm62_vm7 }
  0x8f   :  { %vm70_vm12 = vmor %vm63_vm8, %vm68_vm10 }
  0x90   :  { %vm71_vm13 = vmor %vm64_vm9, %vm69_vm11  ;;  %vm96_vm9 = vcmp.eq.s32.totalorder %v389_v39, %v95_v55  ;;  %vm97_vm11 = vcmp.eq.s32.totalorder %v392_v44, %v95_v55 }
  0x91   :  { %v88_v54 = vpop.permute.xlu1 %87  ;;  %vm77_vm0 = vmor %vm70_vm12, %vm75_vm14 }
  0x92   :  { %vm78_vm2 = vmor %vm71_vm13, %vm76_vm15  ;;  %vm89_vm4 = vcmp.eq.s32.totalorder %v389_v39, %v88_v54  ;;  %vm90_vm6 = vcmp.eq.s32.totalorder %v392_v44, %v88_v54  ;;  %v102_v56 = vpop.permute.xlu0 %101 }
  0x93   :  { %vm84_vm5 = vmor %vm77_vm0, %vm82_vm1  ;;  %vm103_vm14 = vcmp.eq.s32.totalorder %v389_v39, %v102_v56  ;;  %vm104_vm15 = vcmp.eq.s32.totalorder %v392_v44, %v102_v56 }
  0x94   :  { %vm85_vm7 = vmor %vm78_vm2, %vm83_vm3 }
  0x95   :  { %vm91_vm8 = vmor %vm84_vm5, %vm89_vm4  ;;  %vm117_vm5 = vcmp.eq.s32.totalorder %v389_v39, %v116_v58 }
  0x96   :  { %vm92_vm10 = vmor %vm85_vm7, %vm90_vm6  ;;  %vm118_vm7 = vcmp.eq.s32.totalorder %v392_v44, %v116_v58 }
  0x97   :  { %vm98_vm12 = vmor %vm91_vm8, %vm96_vm9  ;;  %vm129_vm9 = vcmp.eq.s32.totalorder %v392_v44, 184 }
  0x98   :  { %vm99_vm13 = vmor %vm92_vm10, %vm97_vm11 }
  0x99   :  { %vm105_vm1 = vmor %vm98_vm12, %vm103_vm14 }
  0x9a   :  { %v109_v57 = vpop.permute.xlu1 %108  ;;  %vm106_vm3 = vmor %vm99_vm13, %vm104_vm15  ;;  %vm133_vm13 = vcmp.eq.s32.totalorder %v392_v44, 185 }
  0x9b   :  { %vm110_vm0 = vcmp.eq.s32.totalorder %v389_v39, %v109_v57  ;;  %vm111_vm2 = vcmp.eq.s32.totalorder %v392_v44, %v109_v57 }
  0x9c   :  { %vm112_vm4 = vmor %vm105_vm1, %vm110_vm0  ;;  %vm137_vm0 = vcmp.eq.s32.totalorder %v392_v44, 186 }
  0x9d   :  { %vm113_vm6 = vmor %vm106_vm3, %vm111_vm2  ;;  %vm141_vm2 = vcmp.eq.s32.totalorder %v392_v44, 187 }
  0x9e   :  { %vm119_vm8 = vmor %vm112_vm4, %vm117_vm5 }
  0x9f   :  { %vm120_vm10 = vmor %vm113_vm6, %vm118_vm7 }
  0xa3   :  { %v123_v59 = vpop.permute.xlu1 %122 }
  0xa4   :  { %vm124_vm11 = vcmp.eq.s32.totalorder %v389_v39, %v123_v59  ;;  %vm125_vm12 = vcmp.eq.s32.totalorder %v392_v44, %v123_v59 }
  0xa5   :  { %vm127_vm14 = vmor %vm120_vm10, %vm125_vm12 }
  0xa6   :  { %vm131_vm15 = vmor %vm127_vm14, %vm129_vm9 }
  0xa7   :  { %vm126_vm1 = vmor %vm119_vm8, %vm124_vm11 }
  0xa8   :  { %v239_v61 = vsel %vm126_vm1, 1.0, %v366_v60  ;;  %vm135_vm3 = vmor %vm131_vm15, %vm133_vm13 }
  0xa9   :  { %196 = vmatmul.f32.vlgmr.msra.gmra.mxu0 %v239_v61  ;;  %vm139_vm4 = vmor %vm135_vm3, %vm137_vm0 }
  0xaa   :  { %vm143_vm5 = vmor %vm139_vm4, %vm141_vm2 }
  0xab   :  { %v240_v62 = vsel %vm143_vm5, 1.0, %v366_v60 }
  0xac   :  { %216 = vmatmul.f32.vlgmr.msra.gmra.mxu1 %v240_v62 }
 0x126   :  { %v197_v63 = vpop.f32.mrf.mxu0 }
 0x129   :  { %v217_v0 = vpop.f32.mrf.mxu1 }
 0x12a   :  { %v218_v1 = vadd.f32 %v217_v0, %v197_v63 }
 0x12c   :  { %220 = vst [vmem:[#allocation7] sm:$0xff] %v218_v1 }
 0x12d   :  { %231 = dma.vmem_to_hbm [thread:$0]  %s227_s1, 128, %s229_s23, [#allocation4]  }
 0x12e   :  { %348 = dma.done.wait [#allocation4], 128  }
 0x12f   :  { %349 = vsyncadd [#allocation4], 4294967168 }
 0x130   :  { %236 = vsyncpa [#allocation3], 1 }
 0x131   :  { %237 = vsyncpa [#allocation6], 1 }
 0x132   :  { %238 = vsyncpa [#allocation4], 1 }

</bundles_post_ra>
